<compile_context>
chip_gen: v7x
topology: tpu7x:2x2x1
jax: 0.10.0
libtpu: 0.0.40
codegen_flags: <defaults>
</compile_context>

<pallas_src>
import jax
import jax.numpy as jnp
from jax import lax
from jax.experimental import pallas as pl
from jax.experimental.pallas import tpu as pltpu


def _round_up(x, m):
    return ((x + m - 1) // m) * m


def _effect_encoder_kernel(ids_ref, table_ref, out_ref):
    # ids_ref:   (B_pad,) int32 in SMEM (scalar prefetch; full ids array).
    # table_ref: (E, D)   embedding table, resident in VMEM (constant index_map).
    # out_ref:   (TB, D)  sublane/lane-dense output tile for this grid step.
    tb = out_ref.shape[0]
    base = pl.program_id(0) * tb

    def body(r, carry):
        idx = ids_ref[base + r]  # cheap scalar read from SMEM
        # Dynamic (1, D) sublane slice gather: table row idx -> output row r.
        out_ref[pl.ds(r, 1), :] = table_ref[pl.ds(idx, 1), :]
        return carry

    lax.fori_loop(0, tb, body, 0)


def effect_encoder(effect_id, embedding_table, *, block_b=None):
    """Forward pass of EffectEncoder: embedding(effect_id).squeeze(1)."""
    if effect_id.ndim == 2:
        assert effect_id.shape[1] == 1, "effect_id must have shape (B, 1)"
        effect_id = effect_id[:, 0]
    assert effect_id.ndim == 1, "effect_id must have shape (B,) or (B, 1)"

    B = effect_id.shape[0]
    E, D = embedding_table.shape
    itemsize = jnp.dtype(embedding_table.dtype).itemsize

    # Batch tile size: multiple of 8 (sublane-dense f32 output blocks); for small
    # batches this collapses the grid to a single step.
    if block_b is None:
        block_b = min(256, _round_up(B, 8))
    block_b = max(8, _round_up(block_b, 8))
    B_pad = _round_up(B, block_b)
    grid = (B_pad // block_b,)

    # Keep the in-kernel dynamic slice in bounds (torch would raise on OOB ids).
    ids = jnp.clip(effect_id.astype(jnp.int32), 0, E - 1)
    if B_pad != B:
        # Padded ids gather row 0; the padded output rows are sliced off below.
        ids = jnp.pad(ids, (0, B_pad - B))

    grid_spec = pltpu.PrefetchScalarGridSpec(
        num_scalar_prefetch=1,
        grid=grid,
        in_specs=[
            # Whole table resident in VMEM; constant index_map => fetched from HBM
            # once and reused across all grid steps.
            pl.BlockSpec((E, D), lambda i, ids_ref: (0, 0)),
        ],
        out_specs=pl.BlockSpec((block_b, D), lambda i, ids_ref: (i, 0)),
    )

    out = pl.pallas_call(
        _effect_encoder_kernel,
        out_shape=jax.ShapeDtypeStruct((B_pad, D), embedding_table.dtype),
        grid_spec=grid_spec,
        compiler_params=pltpu.CompilerParams(
            dimension_semantics=("parallel",),
        ),
        cost_estimate=pl.CostEstimate(
            flops=0,
            transcendentals=0,
            bytes_accessed=(E * D + 2 * B_pad * D) * itemsize + B_pad * 4,
        ),
    )(ids, embedding_table)

    return out[:B] if B_pad != B else out


if __name__ == "__main__":
    num_effects = 16
    embedding_dim = 128   # lane-dense output blocks (multiple of 128)
    batch = 8

    key = jax.random.PRNGKey(0)
    k_emb, k_ids = jax.random.split(key)

    # nn.Embedding default init: N(0, 1)
    embedding_table = jax.random.normal(
        k_emb, (num_effects, embedding_dim), dtype=jnp.float32)

    # effect ids with shape (B, 1), as the module's forward expects.
    effect_id = jax.random.randint(
        k_ids, (batch, 1), minval=0, maxval=num_effects, dtype=jnp.int32)

    out = effect_encoder(effect_id, embedding_table)
    out = jax.block_until_ready(out)

    # correctness check vs plain-JAX reference gather
    ref = embedding_table[effect_id[:, 0]]
    assert out.shape == (batch, embedding_dim)
    assert jnp.allclose(out, ref, atol=1e-6), "mismatch vs reference embedding lookup"

    print("KERNEL_OK")
</pallas_src>

<mosaic_0001>
module attributes {stable_mosaic.version = 11 : i64} {
  func.func @_effect_encoder_kernel(%arg0: i32, %arg1: memref<8xi32, #tpu.memory_space<smem>>, %arg2: memref<16x128xf32, #tpu.memory_space<vmem>>, %arg3: memref<8x128xf32, #tpu.memory_space<vmem>>) attributes {dimension_semantics = [#tpu.dimension_semantics<parallel>], iteration_bounds = array<i64: 1>, scalar_prefetch = 1 : i64, scratch_operands = 0 : i64, tpu.core_type = #tpu.core_type<tc>, window_params = [{pipeline_mode = #tpu.pipeline_mode<synchronous>, transform_indices = @transform_0, window_bounds = array<i64: 16, 128>}, {transform_indices = @transform_1, window_bounds = array<i64: 8, 128>}]} {
    %c8_i32 = arith.constant 8 : i32
    %0 = arith.muli %arg0, %c8_i32 : i32
    %c0_i32 = arith.constant 0 : i32
    %c8_i32_0 = arith.constant 8 : i32
    %1 = arith.addi %c0_i32, %c8_i32_0 : i32
    %c1_i32 = arith.constant 1 : i32
    scf.for %arg4 = %c0_i32 to %1 step %c1_i32  : i32 {
      %2 = arith.addi %0, %arg4 : i32
      %3 = arith.index_cast %2 : i32 to index
      %4 = memref.load %arg1[%3] : memref<8xi32, #tpu.memory_space<smem>>
      %5 = arith.index_cast %4 : i32 to index
      %c0 = arith.constant 0 : index
      %6 = vector.load %arg2[%5, %c0] : memref<16x128xf32, #tpu.memory_space<vmem>>, vector<1x128xf32>
      %7 = arith.index_cast %arg4 : i32 to index
      %c0_2 = arith.constant 0 : index
      %8 = vector.load %arg3[%7, %c0_2] : memref<8x128xf32, #tpu.memory_space<vmem>>, vector<1x128xf32>
      tpu.vector_store %arg3[%7, %c0_2], %6 {strides = array<i32>} : memref<8x128xf32, #tpu.memory_space<vmem>>, vector<1x128xf32>,
    }
    %c8_i32_1 = arith.constant 8 : i32
    return
  }
  func.func @transform_0(%arg0: i32, %arg1: memref<8xi32, #tpu.memory_space<smem>>) -> (i32, i32) {
    %c0_i32 = arith.constant 0 : i32
    %c0_i32_0 = arith.constant 0 : i32
    %c0_i32_1 = arith.constant 0 : i32
    return %c0_i32, %c0_i32_0 : i32, i32
  }
  func.func @transform_1(%arg0: i32, %arg1: memref<8xi32, #tpu.memory_space<smem>>) -> (i32, i32) {
    %c0_i32 = arith.constant 0 : i32
    %c0_i32_0 = arith.constant 0 : i32
    return %arg0, %c0_i32 : i32, i32
  }
}

</mosaic_0001>

<bundles_post_ra>
// kernel: tpu_custom_call.1
= control target key start
LH: loop header
LB: loop body
LE: loop exit
PB: predicated region body
PF: predicated region fallthrough
CT: control target
= control target key end

     0   :  { %s200_s0 = inlined_call_operand.hbm [shape: s32[8], index: 0, kind: input, shape index: {}]   ;;  %s201_s1 = inlined_call_operand.hbm [shape: f32[16,128], index: 1, kind: input, shape index: {}]   ;;  %s202_s2 = inlined_call_operand.hbm [shape: f32[8,128], index: 2, kind: output, shape index: {}]  }
   0x1   :  { %s76_s11 = scalar_lea.hbm %s200_s0, 16 }
   0x2   :  { %p77_p0 = scmp.ne.s32.totalorder %s200_s0, %s76_s11  ;;  %p80_p1 = scmp.lt.u32.totalorder %s76_s11, %s200_s0 }
   0x4   :  { %p82_p2 = pnand %p80_p1, %p77_p0 }
   0x6   :  { %85 = shalt.err (!%p82_p2)  }
   0x7   :  { %s144_s16 = smov [#allocation3]  }
   0x8   :  { %8 = dma.hbm_to_smem %s200_s0, 16, %s144_s16, [#allocation2] }
   0x9   :  { %134 = dma.done.wait [#allocation2], 16 }
   0xa   :  { %135 = vsyncadd [#allocation2], 4294967280 }
   0xb   :  { %10 = sfence }
   0xc   :  { %11 = vsyncpa [#allocation5], 0 }
   0xd   :  { %12 = vsyncpa [#allocation6], 0  ;;  %s145_s19 = smov [#allocation4]   ;;  %s86_s23 = scalar_lea.hbm %s201_s1, 256 }
   0xe   :  { %s18_s20 = sshll.u32 %s145_s19, 4  ;;  %p87_p3 = scmp.ne.s32.totalorder %s201_s1, %s86_s23  ;;  %s19_s20 = int_to_ptr.vmem [resolvable:$true] %s18_s20 }
   0xf   :  { %p90_p4 = scmp.lt.u32.totalorder %s86_s23, %s201_s1 }
  0x11   :  { %p92_p5 = pnand %p90_p4, %p87_p3 }
  0x13   :  { %95 = shalt.err (!%p92_p5)
}
  0x14   :  { %s96_s0 = scalar_lea.vmem %s19_s20, 256  ;;  %p101_p7 = scmp.lt.s32.totalorder %s19_s20, %s19_s20 }
  0x15   :  { %p97_p6 = scmp.ne.s32.totalorder %s19_s20, %s96_s0  ;;  %p102_p8 = scmp.lt.s32.totalorder %s96_s0, %s96_s0 }
  0x17   :  { %p103_p9 = por %p102_p8, %p101_p7 }
  0x19   :  { %p104_p10 = pnand %p103_p9, %p97_p6 }
  0x1b   :  { %107 = shalt.err (!%p104_p10)
}
  0x1c   :  { %s146_s28 = smov 128   ;;  %s147_s29 = smov 8  }
  0x1d   :  { %24 = dma.hbm_to_vmem [thread:$0]  %s201_s1, 256, %s19_s20, [#allocation5], %s146_s28, %s146_s28, %s147_s29  }
  0x1e   :  { %136 = dma.done.wait [#allocation5], 256  }
  0x1f   :  { %137 = vsyncadd [#allocation5], 4294967040  ;;  %s140_s4 = smov 0  }
  0x20 LB: > { %s36_s5 = sld [smem:[#allocation3 + %s142_s4]]  ;;  %s39_s7 = scalar_lea.vmem [#allocation7], %s142_s4  ;;  %s142_s4 = sphi %s140_s4, %s34_s4  }
  0x21   : > { %s34_s4 = sadd.s32 1, %s142_s4  }
  0x22   : > { %p31_p11 = scmp.ge.s32.totalorder %s34_s4, 8  }
  0x23   :  { %s148_s8 = smov (%p31_p11), [#allocation7]  }
  0x24   :  { %33 = sbr.rel (!%p31_p11) target bundleno = 32 (0x20), region = 37  ;;  %s47_s9 = sshll.u32 (%p31_p11), %s148_s8, 4  ;;  %s48_s9 = int_to_ptr.vmem [resolvable:$true] %s47_s9 }
  0x25   :  { %s108_s10 = scalar_lea.vmem (%p31_p11), %s48_s9, 128  ;;  %p113_p13 = scmp.lt.s32.totalorder (%p31_p11), %s48_s9, %s48_s9 }
  0x26   : > { %s37_s6 = scalar_lea.vmem [#allocation4], %s36_s5  ;;  %p109_p12 = scmp.ne.s32.totalorder (%p31_p11), %s48_s9, %s108_s10 }
  0x27   : > { %v38_v0 = vld [vmem:[%s37_s6] sm:$0x1]  ;;  %p114_p0 = scmp.lt.s32.totalorder (%p31_p11), %s108_s10, %s108_s10 }
  0x28   : > { %40 = vst [vmem:[%s39_s7] sm:$0x1] %v38_v0 }
  0x29   :  { %p115_p1 = por (%p31_p11), %p114_p0, %p113_p13 }
  0x2b   :  { %p116_p2 = pnand %p115_p1, %p109_p12 }
  0x2d   :  { %119 = shalt.err (!%p116_p2)
}
  0x2e   :  { %s120_s12 = scalar_lea.hbm %s202_s2, 128 }
  0x2f   :  { %p121_p3 = scmp.ne.s32.totalorder %s202_s2, %s120_s12  ;;  %p124_p4 = scmp.lt.u32.totalorder %s120_s12, %s202_s2 }
  0x31   :  { %p126_p5 = pnand %p124_p4, %p121_p3 }
  0x33   :  { %129 = shalt.err (!%p126_p5)
}
  0x34   :  { %50 = dma.vmem_to_hbm [thread:$0]  %s48_s9, 128, %s202_s2, [#allocation6]  }
  0x35   :  { %138 = dma.done.wait [#allocation6], 128  }
  0x36   :  { %139 = vsyncadd [#allocation6], 4294967168 }
  0x37   :  { %54 = vsyncpa [#allocation5], 1 }
  0x38   :  { %55 = vsyncpa [#allocation6], 1 }

</bundles_post_ra>
